<compile_context>
chip_gen: v7x
topology: tpu7x:2x2x1
jax: 0.10.0
libtpu: 0.0.40
codegen_flags: <defaults>
</compile_context>

<pallas_src>
import math

import jax
import jax.numpy as jnp
from jax.experimental import pallas as pl
from jax.experimental.pallas import tpu as pltpu


# ---------------------------------------------------------------------------
# Stage 1: fused linear projection  y = x @ Wt + b   (Wt is pre-transposed)
# ---------------------------------------------------------------------------
def _linear_kernel(x_ref, wt_ref, b_ref, o_ref):
    o_ref[...] = (
        jnp.dot(x_ref[...], wt_ref[...], preferred_element_type=jnp.float32)
        + b_ref[...]
    ).astype(o_ref.dtype)


def _linear(x, wt, b2, *, tm=512):
    """x: (M, H); wt: (H, H) already transposed; b2: (1, H). Returns (M, H) f32."""
    M, H = x.shape
    if M <= tm:
        blk_m, Mp, xp = M, M, x                      # single block == full dims
    else:
        blk_m = tm                                   # multiple of 8 (tm=512)
        Mp = ((M + tm - 1) // tm) * tm
        xp = jnp.pad(x, ((0, Mp - M), (0, 0))) if Mp != M else x

    out = pl.pallas_call(
        _linear_kernel,
        out_shape=jax.ShapeDtypeStruct((Mp, H), jnp.float32),
        grid_spec=pltpu.PrefetchScalarGridSpec(
            num_scalar_prefetch=0,
            grid=(Mp // blk_m,),
            in_specs=[
                pl.BlockSpec((blk_m, H), lambda i: (i, 0)),   # activation rows
                pl.BlockSpec((H, H), lambda i: (0, 0)),       # weight: resident
                pl.BlockSpec((1, H), lambda i: (0, 0)),       # bias:   resident
            ],
            out_specs=pl.BlockSpec((blk_m, H), lambda i: (i, 0)),
        ),
        compiler_params=pltpu.CompilerParams(
            dimension_semantics=("parallel",)),
    )(xp, wt, b2)
    return out[:M] if Mp != M else out


# ---------------------------------------------------------------------------
# Stage 2: attention on projected q/k/v.  scores/attn oriented (b, Kq, S) so S
# is the lane axis (lane-dense), softmax over the last axis.
# ---------------------------------------------------------------------------
def _attn_kernel(q_ref, k_ref, v_ref, ctx_ref, attn_ref):
    q = q_ref[...]                                   # (TB, Kq, H), scale folded in
    k = k_ref[...]                                   # (TB, S,  H)
    v = v_ref[...]                                   # (TB, S,  H)

    # (TB, Kq, S): S on lanes, no activation transposes.
    scores = jnp.einsum("bkh,bsh->bks", q, k, preferred_element_type=jnp.float32)

    m = jnp.max(scores, axis=-1, keepdims=True)
    e = jnp.exp(scores - m)
    attn = e * pl.reciprocal(jnp.sum(e, axis=-1, keepdims=True), approx=False)

    ctx = jnp.einsum("bks,bsh->bkh", attn, v, preferred_element_type=jnp.float32)

    ctx_ref[...] = ctx.astype(ctx_ref.dtype)
    attn_ref[...] = attn.astype(attn_ref.dtype)


def _attention(q, k, v, *, tb=8):
    """q: (B, Kq, H); k, v: (B, S, H). Returns ctx (B, Kq, H), attn (B, Kq, S)."""
    B, Kq, H = q.shape
    _, S, _ = k.shape
    TB = min(B, tb)
    Bp = ((B + TB - 1) // TB) * TB
    if Bp != B:
        pad = ((0, Bp - B), (0, 0), (0, 0))
        q, k, v = jnp.pad(q, pad), jnp.pad(k, pad), jnp.pad(v, pad)

    ctx, attn = pl.pallas_call(
        _attn_kernel,
        out_shape=(
            jax.ShapeDtypeStruct((Bp, Kq, H), jnp.float32),
            jax.ShapeDtypeStruct((Bp, Kq, S), jnp.float32),
        ),
        grid_spec=pltpu.PrefetchScalarGridSpec(
            num_scalar_prefetch=0,
            grid=(Bp // TB,),
            in_specs=[
                pl.BlockSpec((TB, Kq, H), lambda b: (b, 0, 0)),
                pl.BlockSpec((TB, S, H), lambda b: (b, 0, 0)),
                pl.BlockSpec((TB, S, H), lambda b: (b, 0, 0)),
            ],
            out_specs=[
                pl.BlockSpec((TB, Kq, H), lambda b: (b, 0, 0)),
                pl.BlockSpec((TB, Kq, S), lambda b: (b, 0, 0)),
            ],
        ),
        compiler_params=pltpu.CompilerParams(
            dimension_semantics=("parallel",)),
    )(q, k, v)
    return ctx[:B], attn[:B]


# ---------------------------------------------------------------------------
# Public wrapper (matches the PyTorch module's forward semantics / shapes)
# ---------------------------------------------------------------------------
def scaled_dot_attention(queries, keys, values, params):
    """queries: (B, Kq, H) or (B, H); keys/values: (B, S, H).
    Returns (context (B, Kq, H), attention_weights (B, S, Kq))."""
    if queries.ndim == 2:
        queries = queries[:, None, :]
    B, Kq, H = queries.shape
    _, S, _ = keys.shape
    scale = 1.0 / math.sqrt(float(H))

    wq, bq, wk, bk, wv, bv = params
    # Pre-transpose once; fold the 1/sqrt(H) scaling into the Q projection.
    wqt = (wq * scale).T
    bq_s = (bq * scale).reshape(1, H)
    wkt = wk.T
    wvt = wv.T

    # Flattened (rows, H) projections: one big MXU matmul each.
    q = _linear(queries.reshape(B * Kq, H), wqt, bq_s).reshape(B, Kq, H)
    k = _linear(keys.reshape(B * S, H), wkt, bk.reshape(1, H)).reshape(B, S, H)
    v = _linear(values.reshape(B * S, H), wvt, bv.reshape(1, H)).reshape(B, S, H)

    ctx, attn_ks = _attention(q, k, v)
    attn = jnp.swapaxes(attn_ks, 1, 2)   # (B, S, Kq) — module's public layout
    return ctx, attn


# ---------------------------------------------------------------------------
# Reference + test harness
# ---------------------------------------------------------------------------
def _reference(queries, keys, values, params):
    wq, bq, wk, bk, wv, bv = params
    q = queries @ wq.T + bq
    k = keys @ wk.T + bk
    v = values @ wv.T + bv
    H = queries.shape[-1]
    scores = jnp.einsum("bsh,bkh->bsk", k, q) / jnp.sqrt(jnp.float32(H))
    attn = jax.nn.softmax(scores, axis=1)
    ctx = jnp.einsum("bsk,bsh->bkh", attn, v)
    return ctx, attn


def _init_params(key, hidden_size):
    bound = 1.0 / math.sqrt(hidden_size)
    ks = jax.random.split(key, 6)
    wq = jax.random.uniform(ks[0], (hidden_size, hidden_size), jnp.float32, -bound, bound)
    bq = jax.random.uniform(ks[1], (hidden_size,), jnp.float32, -bound, bound)
    wk = jax.random.uniform(ks[2], (hidden_size, hidden_size), jnp.float32, -bound, bound)
    bk = jax.random.uniform(ks[3], (hidden_size,), jnp.float32, -bound, bound)
    wv = jax.random.uniform(ks[4], (hidden_size, hidden_size), jnp.float32, -bound, bound)
    bv = jax.random.uniform(ks[5], (hidden_size,), jnp.float32, -bound, bound)
    return (wq, bq, wk, bk, wv, bv)


if __name__ == "__main__":
    B, Kq, S, H = 2, 1, 8, 32   # batch, decoder steps (k), seq_len, hidden_size

    key = jax.random.PRNGKey(0)
    kq, kk, kv, kp = jax.random.split(key, 4)
    queries = jax.random.normal(kq, (B, Kq, H), jnp.float32)
    keys = jax.random.normal(kk, (B, S, H), jnp.float32)
    values = jax.random.normal(kv, (B, S, H), jnp.float32)
    params = _init_params(kp, H)

    ctx, attn = scaled_dot_attention(queries, keys, values, params)
    jax.block_until_ready((ctx, attn))

    ctx_ref, attn_ref = _reference(queries, keys, values, params)
    assert ctx.shape == (B, Kq, H) and attn.shape == (B, S, Kq)
    assert jnp.allclose(ctx, ctx_ref, atol=1e-4, rtol=1e-4)
    assert jnp.allclose(attn, attn_ref, atol=2e-5, rtol=1e-4)

    print("KERNEL_OK")
</pallas_src>

<mosaic_0001>
module attributes {stable_mosaic.version = 11 : i64} {
  func.func @_linear_kernel(%arg0: i32, %arg1: memref<2x32xf32, #tpu.memory_space<vmem>>, %arg2: memref<32x32xf32, #tpu.memory_space<vmem>>, %arg3: memref<1x32xf32, #tpu.memory_space<vmem>>, %arg4: memref<2x32xf32, #tpu.memory_space<vmem>>) attributes {dimension_semantics = [#tpu.dimension_semantics<parallel>], iteration_bounds = array<i64: 1>, scalar_prefetch = 0 : i64, scratch_operands = 0 : i64, tpu.core_type = #tpu.core_type<tc>, window_params = [{transform_indices = @transform_0, window_bounds = array<i64: 2, 32>}, {pipeline_mode = #tpu.pipeline_mode<synchronous>, transform_indices = @transform_1, window_bounds = array<i64: 32, 32>}, {pipeline_mode = #tpu.pipeline_mode<synchronous>, transform_indices = @transform_2, window_bounds = array<i64: 1, 32>}, {transform_indices = @transform_3, window_bounds = array<i64: 2, 32>}]} {
    %c0 = arith.constant 0 : index
    %c0_0 = arith.constant 0 : index
    %0 = vector.load %arg1[%c0, %c0_0] : memref<2x32xf32, #tpu.memory_space<vmem>>, vector<2x32xf32>
    %c0_1 = arith.constant 0 : index
    %c0_2 = arith.constant 0 : index
    %1 = vector.load %arg2[%c0_1, %c0_2] : memref<32x32xf32, #tpu.memory_space<vmem>>, vector<32x32xf32>
    %cst = arith.constant dense<0.000000e+00> : vector<2x32xf32>
    %2 = tpu.matmul %0, %1, %cst {dimension_numbers = #tpu.dot_dimension_numbers<[1], [0], [0], [1], [0, 0, 1, 1], [], []>} : vector<2x32xf32>, vector<32x32xf32>, vector<2x32xf32> -> vector<2x32xf32>
    %c0_3 = arith.constant 0 : index
    %c0_4 = arith.constant 0 : index
    %3 = vector.load %arg3[%c0_3, %c0_4] : memref<1x32xf32, #tpu.memory_space<vmem>>, vector<1x32xf32>
    %4 = vector.broadcast %3 : vector<1x32xf32> to vector<2x32xf32>
    %5 = arith.addf %2, %4 : vector<2x32xf32>
    %c0_5 = arith.constant 0 : index
    %c0_6 = arith.constant 0 : index
    %6 = vector.load %arg4[%c0_5, %c0_6] : memref<2x32xf32, #tpu.memory_space<vmem>>, vector<2x32xf32>
    tpu.vector_store %arg4[%c0_5, %c0_6], %5 {strides = array<i32>} : memref<2x32xf32, #tpu.memory_space<vmem>>, vector<2x32xf32>,
    return
  }
  func.func @transform_0(%arg0: i32) -> (i32, i32) {
    %c0_i32 = arith.constant 0 : i32
    %c0_i32_0 = arith.constant 0 : i32
    return %arg0, %c0_i32 : i32, i32
  }
  func.func @transform_1(%arg0: i32) -> (i32, i32) {
    %c0_i32 = arith.constant 0 : i32
    %c0_i32_0 = arith.constant 0 : i32
    %c0_i32_1 = arith.constant 0 : i32
    return %c0_i32, %c0_i32_0 : i32, i32
  }
  func.func @transform_2(%arg0: i32) -> (i32, i32) {
    %c0_i32 = arith.constant 0 : i32
    %c0_i32_0 = arith.constant 0 : i32
    %c0_i32_1 = arith.constant 0 : i32
    return %c0_i32, %c0_i32_0 : i32, i32
  }
  func.func @transform_3(%arg0: i32) -> (i32, i32) {
    %c0_i32 = arith.constant 0 : i32
    %c0_i32_0 = arith.constant 0 : i32
    return %arg0, %c0_i32 : i32, i32
  }
}

</mosaic_0001>

<bundles_post_ra>
// kernel: tpu_custom_call.1
= control target key start
LH: loop header
LB: loop body
LE: loop exit
PB: predicated region body
PF: predicated region fallthrough
CT: control target
= control target key end

     0   :  { %8 = vsyncpa [#allocation3], 0  ;;  %s323_s0 = inlined_call_operand.hbm [shape: f32[2,32], index: 0, kind: input, shape index: {}]   ;;  %s324_s1 = inlined_call_operand.hbm [shape: f32[32,32], index: 1, kind: input, shape index: {}]   ;;  %s325_s2 = inlined_call_operand.vmem [shape: f32[1,32], index: 2, kind: input, shape index: {}]   ;;  %s326_s3 = inlined_call_operand.hbm [shape: f32[2,32], index: 3, kind: output, shape index: {}]  }
   0x1   :  { %9 = vsyncpa [#allocation6], 0 }
   0x2   :  { %10 = vsyncpa [#allocation4], 0  ;;  %s249_s12 = smov [#allocation2]   ;;  %s250_s14 = smov [#allocation5]  }
   0x3   :  { %s17_s13 = sshll.u32 %s249_s12, 4  ;;  %s26_s15 = sshll.u32 %s250_s14, 4  ;;  %s18_s13 = int_to_ptr.vmem [resolvable:$true] %s17_s13  ;;  %s277_s15 = int_to_ptr.vmem [resolvable:$true] %s26_s15 }
   0x4   :  { %s177_s18 = scalar_lea.hbm %s323_s0, 32 }
   0x5   :  { %p178_p0 = scmp.ne.s32.totalorder %s323_s0, %s177_s18  ;;  %p181_p1 = scmp.lt.u32.totalorder %s177_s18, %s323_s0 }
   0x7   :  { %p183_p2 = pnand %p181_p1, %p178_p0 }
   0x9   :  { %186 = shalt.err (!%p183_p2)
}
   0xa   :  { %s187_s23 = scalar_lea.vmem %s18_s13, 32  ;;  %p192_p4 = scmp.lt.s32.totalorder %s18_s13, %s18_s13 }
   0xb   :  { %p188_p3 = scmp.ne.s32.totalorder %s18_s13, %s187_s23  ;;  %p193_p5 = scmp.lt.s32.totalorder %s187_s23, %s187_s23 }
   0xd   :  { %p194_p6 = por %p193_p5, %p192_p4 }
   0xf   :  { %p195_p7 = pnand %p194_p6, %p188_p3 }
  0x11   :  { %198 = shalt.err (!%p195_p7)
}
  0x12   :  { %20 = dma.hbm_to_vmem [thread:$0]  %s323_s0, 32, %s18_s13, [#allocation3]  }
  0x13   :  { %s199_s28 = scalar_lea.hbm %s324_s1, 512 }
  0x14   :  { %p200_p8 = scmp.ne.s32.totalorder %s324_s1, %s199_s28  ;;  %p203_p9 = scmp.lt.u32.totalorder %s199_s28, %s324_s1 }
  0x16   :  { %p205_p10 = pnand %p203_p9, %p200_p8 }
  0x18   :  { %208 = shalt.err (!%p205_p10)
}
  0x19   :  { %s209_s6 = scalar_lea.vmem %s277_s15, 512  ;;  %p214_p12 = scmp.lt.s32.totalorder %s277_s15, %s277_s15 }
  0x1a   :  { %p210_p11 = scmp.ne.s32.totalorder %s277_s15, %s209_s6  ;;  %p215_p13 = scmp.lt.s32.totalorder %s209_s6, %s209_s6 }
  0x1c   :  { %p216_p0 = por %p215_p13, %p214_p12 }
  0x1e   :  { %p217_p1 = pnand %p216_p0, %p210_p11 }
  0x20   :  { %220 = shalt.err (!%p217_p1)
}
  0x21   :  { %s251_s0 = smov 128   ;;  %s252_s7 = smov 8  }
  0x22   :  { %32 = dma.hbm_to_vmem [thread:$0]  %s324_s1, 512, %s277_s15, [#allocation6], %s251_s0, %s251_s0, %s252_s7  }
  0x23   :  { %243 = dma.done.wait [#allocation3], 32  }
  0x24   :  { %244 = vsyncadd [#allocation3], 4294967264 }
  0x25   :  { %245 = dma.done.wait [#allocation6], 512  }
  0x26   :  { %246 = vsyncadd [#allocation6], 4294966784  ;;  %v253_v0 = vmov 0.0|0.0   ;;  %vm254_vm0 = vmmov 0   ;;  %v255_v1 = vmov 0.0   ;;  %v42_v2 = vld [vmem:[#allocation5] sm:$0xff] }
  0x27   :  { %163 = vmatprep.subr.bf16.mxu0 %v253_v0  ;;  %160 = vmatprep.mubr.msk.f32.mxu0 %vm254_vm0, %v255_v1  ;;  %v43_v3 = vld [vmem:[#allocation5 + $0x8] sm:$0xff]  ;;  %v44_v4 = vld [vmem:[#allocation5 + $0x10] sm:$0xff]  ;;  %v45_v6 = vld [vmem:[#allocation5 + $0x18] sm:$0xff]  ;;  %vm53_vm1 = vcmask 261120   ;;  %s256_s11 = smov [#allocation7]   ;;  %vm127_vm2 = vcmask 254976  }
  0x28   :  { %v164_v5 = vpack.c.bf16 %v43_v3, %v42_v2  ;;  %v167_v7 = vpack.c.bf16 %v45_v6, %v44_v4  ;;  %v41_v8 = vld [vmem:[#allocation2] sm:$0x3]  ;;  %s135_s12 = sshll.u32 %s256_s11, 4  ;;  %s136_s12 = int_to_ptr.vmem [resolvable:$true] %s135_s12 }
  0x29   :  { %v145_v9 = vld [vmem:[%s325_s2] ss:$0 sm:$0xff]  ;;  %s221_s13 = scalar_lea.vmem %s136_s12, 32  ;;  %p226_p3 = scmp.lt.s32.totalorder %s136_s12, %s136_s12 }
  0x2a   :  { %165 = vmatpush3.bf16.msra.mxu0 %v164_v5  ;;  %p222_p2 = scmp.ne.s32.totalorder %s136_s12, %s221_s13  ;;  %p227_p4 = scmp.lt.s32.totalorder %s221_s13, %s221_s13 }
  0x2b   :  { %166 = vmatprep.subr.bf16.mxu0 %v253_v0 }
  0x2c   :  { %p228_p5 = por %p227_p4, %p226_p3 }
  0x2e   :  { %168 = vmatpush3.bf16.msra.mxu0 %v167_v7  ;;  %p229_p6 = pnand %p228_p5, %p222_p2 }
  0x31   :  { %161 = vmatmul.mubr.msk.f32.vlgmr.msra.gmra.mrb[0].mxu0 %vm53_vm1, %v41_v8 }
 0x104   :  { %v123_v10 = vpop.f32.mrb[0].mxu0 }
 0x105   :  { %v124_v11 = vadd.f32 %v145_v9, %v123_v10  ;;  %v162_v12 = vpop.f32.mrb[1].mxu0 }
 0x107   :  { %128 = vst.msk [vmem:[#allocation7] sm:$0x3] %vm127_vm2, %v124_v11 }
 0x108   :  { %232 = shalt.err (!%p229_p6)
}
 0x109   :  { %s233_s16 = scalar_lea.hbm %s326_s3, 32 }
 0x10a   :  { %p234_p7 = scmp.ne.s32.totalorder %s326_s3, %s233_s16  ;;  %p237_p8 = scmp.lt.u32.totalorder %s233_s16, %s326_s3 }
 0x10c   :  { %p239_p9 = pnand %p237_p8, %p234_p7 }
 0x10e   :  { %242 = shalt.err (!%p239_p9)
}
 0x10f   :  { %138 = dma.vmem_to_hbm [thread:$0]  %s136_s12, 32, %s326_s3, [#allocation4]  }
 0x110   :  { %247 = dma.done.wait [#allocation4], 32  }
 0x111   :  { %248 = vsyncadd [#allocation4], 4294967264 }
 0x112   :  { %142 = vsyncpa [#allocation3], 1 }
 0x113   :  { %143 = vsyncpa [#allocation6], 1 }
 0x114   :  { %144 = vsyncpa [#allocation4], 1 }

</bundles_post_ra>
